<compile_context>
chip_gen: v7x
topology: tpu7x:2x2x1
jax: 0.10.0
libtpu: 0.0.40
codegen_flags: <defaults>
</compile_context>

<pallas_src>
import functools

import jax
import jax.numpy as jnp
from jax import lax
from jax.experimental import pallas as pl
from jax.experimental.pallas import tpu as pltpu


def _round_up(x, m):
    return ((x + m - 1) // m) * m


def critic_kernel(state_ref, action_ref,
                  w1_ref, b1_ref,
                  w2s_ref, w2a_ref, b2_ref,
                  w3_ref, b3_ref,
                  out_ref):
    # fc1 + relu : (TILE_B, S) @ (S, H) -> (TILE_B, H)
    h1 = jnp.dot(state_ref[...], w1_ref[...],
                 preferred_element_type=jnp.float32) + b1_ref[...]
    h1 = jnp.maximum(h1, 0.0)

    # fc2 over concat([h1, action]) == h1 @ W2[:, :H].T + action @ W2[:, H:].T
    h2 = (jnp.dot(h1, w2s_ref[...], preferred_element_type=jnp.float32)
          + jnp.dot(action_ref[...], w2a_ref[...],
                    preferred_element_type=jnp.float32)
          + b2_ref[...])
    h2 = jnp.maximum(h2, 0.0)

    # fc3 folded into a lane-dense (1, TILE_B) output row:
    # contract H of w3 (1, H) against H of h2 (TILE_B, H) -> (1, TILE_B).
    q_row = lax.dot_general(w3_ref[...], h2,
                            (((1,), (1,)), ((), ())),
                            preferred_element_type=jnp.float32) + b3_ref[...]
    out_ref[...] = q_row.astype(out_ref.dtype)


@functools.partial(jax.jit, static_argnames=("tile_b",))
def critic_forward(state, action, params, *, tile_b=512):
    """state: [B, S], action: [B, A] -> q: [B, 1]."""
    B, S = state.shape
    A = action.shape[1]
    w1, b1, w2s, w2a, b2, w3, b3 = params
    H = w1.shape[1]

    # --- pad hidden dim to a lane multiple (numerically exact: zero pads) ---
    Hp = _round_up(H, 128)
    if Hp != H:
        dh = Hp - H
        w1 = jnp.pad(w1, ((0, 0), (0, dh)))
        b1 = jnp.pad(b1, ((0, 0), (0, dh)))
        w2s = jnp.pad(w2s, ((0, dh), (0, dh)))
        w2a = jnp.pad(w2a, ((0, 0), (0, dh)))
        b2 = jnp.pad(b2, ((0, 0), (0, dh)))
        w3 = jnp.pad(w3, ((0, 0), (0, dh)))
    # TODO(synk): optionally pad state_size/action_size to lane multiples too
    # (legal as-is since the blocks use the full feature dims).

    # --- batch tiling ---
    eff_tile = min(tile_b, _round_up(B, 8))
    eff_tile = max(8, _round_up(eff_tile, 8))
    num_tiles = -(-B // eff_tile)
    B_pad = num_tiles * eff_tile
    if B_pad != B:
        pad = B_pad - B
        state = jnp.pad(state, ((0, pad), (0, 0)))
        action = jnp.pad(action, ((0, pad), (0, 0)))

    in_specs = [
        # streamed activations: one TILE_B-row block per grid step
        pl.BlockSpec((eff_tile, S), lambda i: (i, 0)),
        pl.BlockSpec((eff_tile, A), lambda i: (i, 0)),
        # weights / biases: full arrays, constant index_map -> VMEM-resident
        pl.BlockSpec((S, Hp), lambda i: (0, 0)),
        pl.BlockSpec((1, Hp), lambda i: (0, 0)),
        pl.BlockSpec((Hp, Hp), lambda i: (0, 0)),
        pl.BlockSpec((A, Hp), lambda i: (0, 0)),
        pl.BlockSpec((1, Hp), lambda i: (0, 0)),
        pl.BlockSpec((1, Hp), lambda i: (0, 0)),
        pl.BlockSpec((1, 1), lambda i: (0, 0)),
    ]
    # lane-dense output: batch lives on the 128-lane axis
    out_spec = pl.BlockSpec((1, eff_tile), lambda i: (0, i))

    q_row = pl.pallas_call(
        critic_kernel,
        out_shape=jax.ShapeDtypeStruct((1, B_pad), jnp.float32),
        grid=(num_tiles,),
        in_specs=in_specs,
        out_specs=out_spec,
        compiler_params=pltpu.CompilerParams(
            dimension_semantics=("parallel",),
            vmem_limit_bytes=32 * 1024 * 1024,
        ),
    )(state, action, w1, b1, w2s, w2a, b2, w3, b3)

    return q_row[0, :B].reshape(B, 1)


def init_critic_params(key, state_size, action_size, hidden_size=256):
    """Deterministic init mimicking PyTorch nn.Linear (uniform +/- 1/sqrt(fan_in))."""
    k1, k2, k3, k4, k5, k6 = jax.random.split(key, 6)

    def uniform(k, shape, fan_in):
        bound = 1.0 / jnp.sqrt(jnp.float32(fan_in))
        return jax.random.uniform(k, shape, jnp.float32, -bound, bound)

    # fc1: (hidden, state) -> stored transposed (state, hidden)
    w1 = uniform(k1, (state_size, hidden_size), state_size)
    b1 = uniform(k2, (1, hidden_size), state_size)

    # fc2: (hidden, hidden + action) -> split & transpose
    w2_full = uniform(k3, (hidden_size + action_size, hidden_size),
                      hidden_size + action_size)
    w2s = w2_full[:hidden_size, :]        # multiplies x_state
    w2a = w2_full[hidden_size:, :]        # multiplies action
    b2 = uniform(k4, (1, hidden_size), hidden_size + action_size)

    # fc3: stored as a row (1, hidden) — the natural PyTorch (out, in) layout
    w3 = uniform(k5, (1, hidden_size), hidden_size)
    b3 = uniform(k6, (1, 1), hidden_size)

    return (w1, b1, w2s, w2a, b2, w3, b3)


if __name__ == "__main__":
    key = jax.random.PRNGKey(0)
    k_state, k_action, k_params = jax.random.split(key, 3)

    batch = 8
    state_size = 4
    action_size = 2
    hidden_size = 32

    state = jax.random.normal(k_state, (batch, state_size), jnp.float32)
    action = jax.random.normal(k_action, (batch, action_size), jnp.float32)
    params = init_critic_params(k_params, state_size, action_size, hidden_size)

    q = critic_forward(state, action, params)
    q = jax.block_until_ready(q)

    # Pure-JAX reference check of the same forward pass.
    w1, b1, w2s, w2a, b2, w3, b3 = params
    h1 = jnp.maximum(state @ w1 + b1, 0.0)
    x = jnp.concatenate([h1, action], axis=1)
    w2_full = jnp.concatenate([w2s, w2a], axis=0)
    h2 = jnp.maximum(x @ w2_full + b2, 0.0)
    q_ref = h2 @ w3.T + b3
    assert q.shape == (batch, 1)
    assert jnp.allclose(q, q_ref, atol=1e-5, rtol=1e-5)

    print("KERNEL_OK")
</pallas_src>

<mosaic_0001>
module attributes {stable_mosaic.version = 11 : i64} {
  func.func @critic_kernel(%arg0: i32, %arg1: memref<8x4xf32, #tpu.memory_space<vmem>>, %arg2: memref<8x2xf32, #tpu.memory_space<vmem>>, %arg3: memref<4x128xf32, #tpu.memory_space<vmem>>, %arg4: memref<1x128xf32, #tpu.memory_space<vmem>>, %arg5: memref<128x128xf32, #tpu.memory_space<vmem>>, %arg6: memref<2x128xf32, #tpu.memory_space<vmem>>, %arg7: memref<1x128xf32, #tpu.memory_space<vmem>>, %arg8: memref<1x128xf32, #tpu.memory_space<vmem>>, %arg9: memref<1x1xf32, #tpu.memory_space<vmem>>, %arg10: memref<1x8xf32, #tpu.memory_space<vmem>>) attributes {dimension_semantics = [#tpu.dimension_semantics<parallel>], iteration_bounds = array<i64: 1>, scalar_prefetch = 0 : i64, scratch_operands = 0 : i64, tpu.core_type = #tpu.core_type<tc>, window_params = [{transform_indices = @transform_0, window_bounds = array<i64: 8, 4>}, {transform_indices = @transform_1, window_bounds = array<i64: 8, 2>}, {pipeline_mode = #tpu.pipeline_mode<synchronous>, transform_indices = @transform_2, window_bounds = array<i64: 4, 128>}, {pipeline_mode = #tpu.pipeline_mode<synchronous>, transform_indices = @transform_3, window_bounds = array<i64: 1, 128>}, {pipeline_mode = #tpu.pipeline_mode<synchronous>, transform_indices = @transform_4, window_bounds = array<i64: 128, 128>}, {pipeline_mode = #tpu.pipeline_mode<synchronous>, transform_indices = @transform_5, window_bounds = array<i64: 2, 128>}, {pipeline_mode = #tpu.pipeline_mode<synchronous>, transform_indices = @transform_6, window_bounds = array<i64: 1, 128>}, {pipeline_mode = #tpu.pipeline_mode<synchronous>, transform_indices = @transform_7, window_bounds = array<i64: 1, 128>}, {pipeline_mode = #tpu.pipeline_mode<synchronous>, transform_indices = @transform_8, window_bounds = array<i64: 1, 1>}, {transform_indices = @transform_9, window_bounds = array<i64: 1, 8>}]} {
    %c0 = arith.constant 0 : index
    %c0_0 = arith.constant 0 : index
    %0 = vector.load %arg1[%c0, %c0_0] : memref<8x4xf32, #tpu.memory_space<vmem>>, vector<8x4xf32>
    %c0_1 = arith.constant 0 : index
    %c0_2 = arith.constant 0 : index
    %1 = vector.load %arg3[%c0_1, %c0_2] : memref<4x128xf32, #tpu.memory_space<vmem>>, vector<4x128xf32>
    %cst = arith.constant dense<0.000000e+00> : vector<8x128xf32>
    %2 = tpu.matmul %0, %1, %cst {dimension_numbers = #tpu.dot_dimension_numbers<[1], [0], [0], [1], [0, 0, 1, 1], [], []>} : vector<8x4xf32>, vector<4x128xf32>, vector<8x128xf32> -> vector<8x128xf32>
    %c0_3 = arith.constant 0 : index
    %c0_4 = arith.constant 0 : index
    %3 = vector.load %arg4[%c0_3, %c0_4] : memref<1x128xf32, #tpu.memory_space<vmem>>, vector<1x128xf32>
    %4 = vector.broadcast %3 : vector<1x128xf32> to vector<8x128xf32>
    %5 = arith.addf %2, %4 : vector<8x128xf32>
    %cst_5 = arith.constant 0.000000e+00 : f32
    %6 = vector.broadcast %cst_5 : f32 to vector<8x128xf32>
    %7 = arith.maximumf %5, %6 : vector<8x128xf32>
    %c0_6 = arith.constant 0 : index
    %c0_7 = arith.constant 0 : index
    %8 = vector.load %arg5[%c0_6, %c0_7] : memref<128x128xf32, #tpu.memory_space<vmem>>, vector<128x128xf32>
    %cst_8 = arith.constant dense<0.000000e+00> : vector<8x128xf32>
    %9 = tpu.matmul %7, %8, %cst_8 {dimension_numbers = #tpu.dot_dimension_numbers<[1], [0], [0], [1], [0, 0, 1, 1], [], []>} : vector<8x128xf32>, vector<128x128xf32>, vector<8x128xf32> -> vector<8x128xf32>
    %c0_9 = arith.constant 0 : index
    %c0_10 = arith.constant 0 : index
    %10 = vector.load %arg2[%c0_9, %c0_10] : memref<8x2xf32, #tpu.memory_space<vmem>>, vector<8x2xf32>
    %c0_11 = arith.constant 0 : index
    %c0_12 = arith.constant 0 : index
    %11 = vector.load %arg6[%c0_11, %c0_12] : memref<2x128xf32, #tpu.memory_space<vmem>>, vector<2x128xf32>
    %cst_13 = arith.constant dense<0.000000e+00> : vector<8x128xf32>
    %12 = tpu.matmul %10, %11, %cst_13 {dimension_numbers = #tpu.dot_dimension_numbers<[1], [0], [0], [1], [0, 0, 1, 1], [], []>} : vector<8x2xf32>, vector<2x128xf32>, vector<8x128xf32> -> vector<8x128xf32>
    %13 = arith.addf %9, %12 : vector<8x128xf32>
    %c0_14 = arith.constant 0 : index
    %c0_15 = arith.constant 0 : index
    %14 = vector.load %arg7[%c0_14, %c0_15] : memref<1x128xf32, #tpu.memory_space<vmem>>, vector<1x128xf32>
    %15 = vector.broadcast %14 : vector<1x128xf32> to vector<8x128xf32>
    %16 = arith.addf %13, %15 : vector<8x128xf32>
    %cst_16 = arith.constant 0.000000e+00 : f32
    %17 = vector.broadcast %cst_16 : f32 to vector<8x128xf32>
    %18 = arith.maximumf %16, %17 : vector<8x128xf32>
    %c0_17 = arith.constant 0 : index
    %c0_18 = arith.constant 0 : index
    %19 = vector.load %arg8[%c0_17, %c0_18] : memref<1x128xf32, #tpu.memory_space<vmem>>, vector<1x128xf32>
    %cst_19 = arith.constant dense<0.000000e+00> : vector<1x8xf32>
    %20 = tpu.matmul %19, %18, %cst_19 {dimension_numbers = #tpu.dot_dimension_numbers<[1], [1], [0], [0], [0, 0, 1, 0], [], []>} : vector<1x128xf32>, vector<8x128xf32>, vector<1x8xf32> -> vector<1x8xf32>
    %c0_20 = arith.constant 0 : index
    %c0_21 = arith.constant 0 : index
    %21 = vector.load %arg9[%c0_20, %c0_21] : memref<1x1xf32, #tpu.memory_space<vmem>>, vector<1x1xf32>
    %22 = vector.broadcast %21 : vector<1x1xf32> to vector<1x8xf32>
    %23 = arith.addf %20, %22 : vector<1x8xf32>
    %c0_22 = arith.constant 0 : index
    %c0_23 = arith.constant 0 : index
    %24 = vector.load %arg10[%c0_22, %c0_23] : memref<1x8xf32, #tpu.memory_space<vmem>>, vector<1x8xf32>
    tpu.vector_store %arg10[%c0_22, %c0_23], %23 {strides = array<i32>} : memref<1x8xf32, #tpu.memory_space<vmem>>, vector<1x8xf32>,
    return
  }
  func.func @transform_0(%arg0: i32) -> (i32, i32) {
    %c0_i32 = arith.constant 0 : i32
    %c0_i32_0 = arith.constant 0 : i32
    return %arg0, %c0_i32 : i32, i32
  }
  func.func @transform_1(%arg0: i32) -> (i32, i32) {
    %c0_i32 = arith.constant 0 : i32
    %c0_i32_0 = arith.constant 0 : i32
    return %arg0, %c0_i32 : i32, i32
  }
  func.func @transform_2(%arg0: i32) -> (i32, i32) {
    %c0_i32 = arith.constant 0 : i32
    %c0_i32_0 = arith.constant 0 : i32
    %c0_i32_1 = arith.constant 0 : i32
    return %c0_i32, %c0_i32_0 : i32, i32
  }
  func.func @transform_3(%arg0: i32) -> (i32, i32) {
    %c0_i32 = arith.constant 0 : i32
    %c0_i32_0 = arith.constant 0 : i32
    %c0_i32_1 = arith.constant 0 : i32
    return %c0_i32, %c0_i32_0 : i32, i32
  }
  func.func @transform_4(%arg0: i32) -> (i32, i32) {
    %c0_i32 = arith.constant 0 : i32
    %c0_i32_0 = arith.constant 0 : i32
    %c0_i32_1 = arith.constant 0 : i32
    return %c0_i32, %c0_i32_0 : i32, i32
  }
  func.func @transform_5(%arg0: i32) -> (i32, i32) {
    %c0_i32 = arith.constant 0 : i32
    %c0_i32_0 = arith.constant 0 : i32
    %c0_i32_1 = arith.constant 0 : i32
    return %c0_i32, %c0_i32_0 : i32, i32
  }
  func.func @transform_6(%arg0: i32) -> (i32, i32) {
    %c0_i32 = arith.constant 0 : i32
    %c0_i32_0 = arith.constant 0 : i32
    %c0_i32_1 = arith.constant 0 : i32
    return %c0_i32, %c0_i32_0 : i32, i32
  }
  func.func @transform_7(%arg0: i32) -> (i32, i32) {
    %c0_i32 = arith.constant 0 : i32
    %c0_i32_0 = arith.constant 0 : i32
    %c0_i32_1 = arith.constant 0 : i32
    return %c0_i32, %c0_i32_0 : i32, i32
  }
  func.func @transform_8(%arg0: i32) -> (i32, i32) {
    %c0_i32 = arith.constant 0 : i32
    %c0_i32_0 = arith.constant 0 : i32
    %c0_i32_1 = arith.constant 0 : i32
    return %c0_i32, %c0_i32_0 : i32, i32
  }
  func.func @transform_9(%arg0: i32) -> (i32, i32) {
    %c0_i32 = arith.constant 0 : i32
    %c0_i32_0 = arith.constant 0 : i32
    return %c0_i32, %arg0 : i32, i32
  }
}

</mosaic_0001>

<bundles_post_ra>
// kernel: critic_forward.1
= control target key start
LH: loop header
LB: loop body
LE: loop exit
PB: predicated region body
PF: predicated region fallthrough
CT: control target
= control target key end

     0   :  { %s671_s0 = inlined_call_operand.vmem [shape: f32[8,4], index: 0, kind: input, shape index: {}]   ;;  %s672_s1 = inlined_call_operand.vmem [shape: f32[8,2], index: 1, kind: input, shape index: {}]   ;;  %s673_s2 = inlined_call_operand.vmem [shape: f32[4,128], index: 2, kind: input, shape index: {}]   ;;  %s674_s3 = inlined_call_operand.vmem [shape: f32[1,128], index: 3, kind: input, shape index: {}]   ;;  %s675_s4 = inlined_call_operand.vmem [shape: f32[128,128], index: 4, kind: input, shape index: {}]   ;;  %s676_s5 = inlined_call_operand.vmem [shape: f32[2,128], index: 5, kind: input, shape index: {}]   ;;  %s677_s6 = inlined_call_operand.vmem [shape: f32[1,128], index: 6, kind: input, shape index: {}]   ;;  %s678_s7 = inlined_call_operand.vmem [shape: f32[1,128], index: 7, kind: input, shape index: {}]   ;;  %s679_s8 = inlined_call_operand.<no memory space> [shape: f32[1,1], index: 8, kind: input, shape index: {}]   ;;  %s680_s9 = inlined_call_operand.hbm [shape: f32[1,8], index: 9, kind: output, shape index: {}]  }
   0x1   :  { %v14_v0 = vstv %s679_s8 }
   0x2   :  { %15 = vst [vmem:[#allocation2] sm:$0x1] %v14_v0 }
   0x3   :  { %v36_v1 = vld [vmem:[%s673_s2] sm:$0xf]  ;;  %vm48_vm0 = vcmask 1043456   ;;  %v528_v3 = vmov 0.0   ;;  %vm529_vm1 = vmmov 0   ;;  %vm44_vm2 = vcmask 31744  }
   0x4   :  { %v35_v2 = vld [vmem:[%s671_s0] sm:$0xff]  ;;  %424 = vmatprep.subr.mxu1 %v528_v3  ;;  %426 = vmatprep.mubr.msk.f32.mxu1 %vm529_vm1, %v528_v3  ;;  %v124_v5 = vld [vmem:[%s675_s4 + $0x8] sm:$0xff]  ;;  %v125_v6 = vld [vmem:[%s675_s4 + $0x10] sm:$0xff]  ;;  %v530_v7 = vmov 0.0|0.0  }
   0x5   :  { %v123_v4 = vld [vmem:[%s675_s4] sm:$0xff]  ;;  %425 = vmatpush3.msk.msra.mxu1 %vm48_vm0, %v36_v1  ;;  %474 = vmatprep.subr.bf16.mxu0 %v530_v7  ;;  %v126_v9 = vld [vmem:[%s675_s4 + $0x18] sm:$0xff]  ;;  %v128_v12 = vld [vmem:[%s675_s4 + $0x28] sm:$0xff] }
   0x6   :  { %v475_v8 = vpack.c.bf16 %v124_v5, %v123_v4  ;;  %427 = vmatmul.mubr.msk.f32.vlgmr.msra.gmra.mrb[0].mxu1 %vm44_vm2, %v35_v2  ;;  %429 = vmatprep.subr.mxu1 %v528_v3  ;;  %v478_v10 = vpack.c.bf16 %v126_v9, %v125_v6  ;;  %v127_v11 = vld [vmem:[%s675_s4 + $0x20] sm:$0xff] }
   0x7   :  { %431 = vmatprep.mubr.msk.f32.mxu1 %vm529_vm1, %v528_v3  ;;  %466 = vmatprep.mubr.msk.f32.mxu0 %vm529_vm1, %v528_v3 }
   0x8   :  { %476 = vmatpush3.bf16.msra.mxu0 %v475_v8 }
   0x9   :  { %477 = vmatprep.subr.bf16.mxu0 %v530_v7 }
   0xa   :  { %16 = vsyncpa [#allocation4], 0  ;;  %v481_v13 = vpack.c.bf16 %v128_v12, %v127_v11  ;;  %v129_v14 = vld [vmem:[%s675_s4 + $0x30] sm:$0xff]  ;;  %v130_v15 = vld [vmem:[%s675_s4 + $0x38] sm:$0xff]  ;;  %vm145_vm3 = vcmask 1041408   ;;  %vm141_vm4 = vcmask 15360   ;;  %v305_v47 = vlaneseq }
   0xb   :  { %v484_v16 = vpack.c.bf16 %v130_v15, %v129_v14  ;;  %v131_v17 = vld [vmem:[%s675_s4 + $0x40] sm:$0xff]  ;;  %v132_v18 = vld [vmem:[%s675_s4 + $0x48] sm:$0xff]  ;;  %v133_v20 = vld [vmem:[%s675_s4 + $0x50] sm:$0xff]  ;;  %v531_v39 = vmov 0   ;;  %s532_s26 = smov [#allocation3]   ;;  %vm379_vm5 = vcmask 57344  }
   0xc   :  { %479 = vmatpush3.bf16.msra.mxu0 %v478_v10  ;;  %v487_v19 = vpack.c.bf16 %v132_v18, %v131_v17  ;;  %v134_v21 = vld [vmem:[%s675_s4 + $0x58] sm:$0xff]  ;;  %v135_v23 = vld [vmem:[%s675_s4 + $0x60] sm:$0xff]  ;;  %v136_v24 = vld [vmem:[%s675_s4 + $0x68] sm:$0xff]  ;;  %503 = vset.pattern.permute.xlu0 %v531_v39  ;;  %v306_v48 = vshrl.u32 %v305_v47, 7  ;;  %s387_s27 = sshll.u32 %s532_s26, 4  ;;  %s388_s27 = int_to_ptr.vmem [resolvable:$true] %s387_s27 }
   0xd   :  { %480 = vmatprep.subr.bf16.mxu0 %v530_v7  ;;  %v490_v22 = vpack.c.bf16 %v134_v21, %v133_v20  ;;  %v493_v25 = vpack.c.bf16 %v136_v24, %v135_v23  ;;  %v137_v26 = vld [vmem:[%s675_s4 + $0x70] sm:$0xff]  ;;  %v138_v27 = vld [vmem:[%s675_s4 + $0x78] sm:$0xff]  ;;  %v140_v29 = vld [vmem:[%s676_s5] sm:$0x3]  ;;  %s508_s28 = scalar_lea.vmem %s388_s27, 32  ;;  %p509_p1 = scmp.lt.s32.totalorder %s388_s27, %s388_s27 }
   0xe   :  { %v496_v28 = vpack.c.bf16 %v138_v27, %v137_v26  ;;  %430 = vmatpush3.msk.msra.mxu1 %vm145_vm3, %v140_v29  ;;  %v139_v30 = vld [vmem:[%s672_s1] sm:$0xff]  ;;  %v307_v49 = vsub.s32 0, %v306_v48 }
   0xf   :  { %432 = vmatmul.mubr.msk.f32.vlgmr.msra.gmra.mrb[2].mxu1 %vm141_vm4, %v139_v30  ;;  %469 = vmatprep.subr.mxu1 %v528_v3  ;;  %v395_v31 = vld [vmem:[%s674_s3] ss:$0 sm:$0xff] }
  0x10   :  { %482 = vmatpush3.bf16.msra.mxu0 %v481_v13  ;;  %471 = vmatprep.mubr.msk.f32.mxu1 %vm529_vm1, %v528_v3  ;;  %v299_v38 = vld [vmem:[#allocation2] sm:$0x1] }
  0x11   :  { %483 = vmatprep.subr.bf16.mxu0 %v530_v7  ;;  %302 = vperm.xlu0 %503, %v299_v38   ;;  %v400_v41 = vld [vmem:[%s677_s6] ss:$0 sm:$0xff]  ;;  %s504_s6 = scalar_lea.vmem %s388_s27, 16 }
  0x12   :  { %v298_v46 = vld [vmem:[%s678_s7] sm:$0x1]  ;;  %p505_p0 = scmp.ne.s32.totalorder %s388_s27, %s504_s6  ;;  %p510_p2 = scmp.lt.s32.totalorder %s508_s28, %s504_s6 }
  0x14   :  { %485 = vmatpush3.bf16.msra.mxu0 %v484_v16  ;;  %p511_p3 = por %p510_p2, %p509_p1 }
  0x15   :  { %486 = vmatprep.subr.bf16.mxu0 %v530_v7 }
  0x16   :  { %p512_p4 = pnand %p511_p3, %p505_p0 }
  0x18   :  { %488 = vmatpush3.bf16.msra.mxu0 %v487_v19 }
  0x19   :  { %489 = vmatprep.subr.bf16.mxu0 %v530_v7 }
  0x1c   :  { %491 = vmatpush3.bf16.msra.mxu0 %v490_v22 }
  0x1d   :  { %492 = vmatprep.subr.bf16.mxu0 %v530_v7 }
  0x20   :  { %494 = vmatpush3.bf16.msra.mxu0 %v493_v25 }
  0x21   :  { %495 = vmatprep.subr.bf16.mxu0 %v530_v7 }
  0x24   :  { %497 = vmatpush3.bf16.msra.mxu0 %v496_v28 }
  0x90   :  { %v303_v50 = vpop.permute.xlu0 %302 }
  0x91   :  { %v308_v51 = vrot.slane %v303_v50, %v307_v49 }
  0xd9   :  { %v118_v32 = vpop.f32.mrb[0].mxu1 }
  0xda   :  { %v119_v33 = vadd.f32 %v395_v31, %v118_v32  ;;  %v428_v34 = vpop.f32.mrb[1].mxu1 }
  0xdc   :  { %v122_v35 = vmax.f32 %v119_v33, 0.0 }
  0xde   :  { %467 = vmatmul.mubr.f32.vlgmr.msra.gmra.mrb[0].mxu0 %v122_v35 }
  0xe2   :  { %v215_v36 = vpop.f32.mrb[2].mxu1 }
  0xe3   :  { %v433_v37 = vpop.f32.mrb[3].mxu1 }
 0x1b1   :  { %v285_v40 = vpop.f32.mrb[0].mxu0 }
 0x1b2   :  { %v286_v42 = vadd.f32 %v285_v40, %v215_v36  ;;  %v468_v43 = vpop.f32.mrb[1].mxu0 }
 0x1b4   :  { %v296_v44 = vadd.f32 %v400_v41, %v286_v42 }
 0x1b6   :  { %v297_v45 = vmax.f32 %v296_v44, 0.0 }
 0x1b8   :  { %470 = vmatpush3.xpose.msra.mxu1 %v297_v45 }
 0x1bb   :  { %472 = vmatmul.mubr.f32.vlgmr.msra.gmra.mrb[4].mxu1 %v298_v46 }
 0x28e   :  { %v375_v52 = vpop.f32.mrb[4].mxu1 }
 0x28f   :  { %v376_v53 = vadd.f32 %v375_v52, %v308_v51  ;;  %v473_v54 = vpop.f32.mrb[5].mxu1 }
 0x291   :  { %380 = vst.msk [vmem:[#allocation3] sm:$0x1] %vm379_vm5, %v376_v53 }
 0x292   :  { %515 = shalt.err (!%p512_p4)
}
 0x293   :  { %s516_s30 = scalar_lea.hbm %s680_s9, 16 }
 0x294   :  { %p517_p5 = scmp.ne.s32.totalorder %s680_s9, %s516_s30  ;;  %p520_p6 = scmp.lt.u32.totalorder %s516_s30, %s680_s9 }
 0x296   :  { %p522_p7 = pnand %p520_p6, %p517_p5 }
 0x298   :  { %525 = shalt.err (!%p522_p7)
}
 0x299   :  { %390 = dma.vmem_to_hbm [thread:$0]  %s388_s27, 16, %s680_s9, [#allocation4]  }
 0x29a   :  { %526 = dma.done.wait [#allocation4], 16  }
 0x29b   :  { %527 = vsyncadd [#allocation4], 4294967280 }
 0x29c   :  { %394 = vsyncpa [#allocation4], 1 }

</bundles_post_ra>
